<compile_context>
chip_gen: v7x
topology: tpu7x:2x2x1
jax: 0.10.0
libtpu: 0.0.40
codegen_flags: <defaults>
</compile_context>

<pallas_src>
import functools

import jax
import jax.numpy as jnp
from jax.experimental import pallas as pl
from jax.experimental.pallas import tpu as pltpu


def _layernorm_kernel(x_ref, w_ref, b_ref, o_ref, *, eps, inv_hidden):
    # x_ref: (block_rows, hidden) tile in VMEM; w_ref/b_ref: (1, hidden) f32.
    x = x_ref[...].astype(jnp.float32)
    # One-pass statistics: var = E[x^2] - E[x]^2, clamped at 0 to guard
    # against cancellation when |mean| >> std. All stats stay in f32.
    s1 = jnp.sum(x, axis=-1, keepdims=True)
    s2 = jnp.sum(x * x, axis=-1, keepdims=True)
    mean = s1 * inv_hidden
    var = jnp.maximum(s2 * inv_hidden - mean * mean, 0.0)
    inv = jax.lax.rsqrt(var + eps)  # EUP
    # Fuse normalize + affine; downcast only at the store.
    o_ref[...] = ((x - mean) * inv * w_ref[...] + b_ref[...]).astype(o_ref.dtype)


def _vmem_capacity_bytes():
    # Generation-aware VMEM size (v7x: 64 MiB/TC, v5e/v6e: 128 MiB).
    try:
        cap = int(pltpu.get_tpu_info().vmem_capacity_bytes)
        if cap > 0:
            return cap
    except Exception:
        pass
    try:
        kind = jax.devices()[0].device_kind.lower()
        if ("v5" in kind) or ("v6" in kind):
            return 128 * 1024 * 1024
    except Exception:
        pass
    return 64 * 1024 * 1024  # conservative (covers v7x and unknown parts)


def _num_tensorcores():
    # TensorCores per chip; 1 on v5e/v6e, 2 on v7x.
    try:
        info = pltpu.get_tpu_info()
        for attr in ("num_tensorcores", "tensorcore_count", "num_cores", "core_count"):
            v = getattr(info, attr, None)
            if isinstance(v, int) and v > 0:
                return v
    except Exception:
        pass
    try:
        kind = jax.devices()[0].device_kind.lower()
        if "v7" in kind:
            return 2
    except Exception:
        pass
    return 1


def _vmem_bytes_per_row(hidden, itemsize):
    # Per-row VMEM per pipeline step:
    #   double-buffered input tile + double-buffered output tile (dtype)
    #   + ~3 f32 tiles of live intermediates (upcast x, x*x / (x-mean)*inv).
    return hidden * (4 * itemsize + 3 * 4)


def _pick_block_rows(rows, hidden, dtype, vmem_cap, num_cores):
    itemsize = jnp.dtype(dtype).itemsize
    # Sublane packing multiple: 8 for 32-bit, 16 for 16-bit, 32 for 8-bit.
    sublane = {4: 8, 2: 16, 1: 32}.get(itemsize, 8)

    # Target input-tile size: large enough to sit on the HBM roofline
    # (amortize ~0.35 us per grid step); bigger on 128 MiB parts.
    target_tile_bytes = 8 * 1024 * 1024 if vmem_cap >= (96 << 20) else 4 * 1024 * 1024
    target_rows = max(sublane, target_tile_bytes // max(hidden * itemsize, 1))

    # VMEM budget: keep the full working set under half of physical VMEM so
    # the vmem_limit we request in the wrapper always admits the tile.
    budget = vmem_cap // 2
    per_row = _vmem_bytes_per_row(hidden, itemsize)
    max_rows = max(sublane, (budget // max(per_row, 1)) // sublane * sublane)

    block_rows = min(target_rows, max_rows)

    # Multi-TensorCore (v7x): keep >= 2 steps per core so 'parallel' sharding
    # stays balanced and each core still double-buffers across its steps.
    # Single-TC parts (v5e/v6e): no clamp -- a serial grid step is pure
    # overhead there.
    if num_cores > 1 and rows > sublane * num_cores:
        min_steps = 2 * num_cores
        block_rows = min(block_rows, max(sublane, pl.cdiv(rows, min_steps)))

    # Round down to the sublane multiple, never below one sublane group.
    block_rows = max(sublane, (block_rows // sublane) * sublane)
    # No point in a tile larger than the whole (sublane-rounded) problem.
    rows_rounded = max(sublane, pl.cdiv(rows, sublane) * sublane)
    block_rows = min(block_rows, rows_rounded)
    return block_rows


def layer_norm_pallas(x, weight, bias, eps=1e-12, block_rows=None):
    orig_shape = x.shape
    hidden = orig_shape[-1]
    rows = 1
    for d in orig_shape[:-1]:
        rows *= d
    x2 = x.reshape(rows, hidden)
    # Upcast weight/bias once here: their block index is constant so they are
    # DMA'd once; no per-step cast inside the kernel body.
    w2 = weight.astype(jnp.float32).reshape(1, hidden)
    b2 = bias.astype(jnp.float32).reshape(1, hidden)

    itemsize = jnp.dtype(x.dtype).itemsize
    vmem_cap = _vmem_capacity_bytes()
    num_cores = _num_tensorcores()
    if block_rows is None:
        block_rows = _pick_block_rows(rows, hidden, x.dtype, vmem_cap, num_cores)

    grid = (pl.cdiv(rows, block_rows),)  # ragged last block handled by Pallas

    # Scoped-VMEM request sized from the actual tile (tile was budgeted to
    # <= vmem_cap/2, so the limit always covers it with margin).
    vmem_needed = block_rows * _vmem_bytes_per_row(hidden, itemsize) + 4 * hidden * 4
    vmem_limit = min(int(vmem_cap * 0.9),
                     max(int(vmem_needed * 1.3), 32 * 1024 * 1024))
    vmem_limit = max(vmem_limit, int(vmem_needed))

    # Bandwidth-bound op: 2 passes over the data (read + write) plus params.
    cost = pl.CostEstimate(
        flops=7 * rows * hidden,
        transcendentals=rows,
        bytes_accessed=2 * rows * hidden * itemsize + 2 * hidden * 4,
    )

    # Note: if hidden is not a multiple of 128, output stores are masked
    # partial vst; typical transformer hiddens (768/1024/4096) are lane-dense.
    out = pl.pallas_call(
        functools.partial(_layernorm_kernel, eps=eps, inv_hidden=1.0 / hidden),
        out_shape=jax.ShapeDtypeStruct((rows, hidden), x.dtype),
        grid_spec=pltpu.PrefetchScalarGridSpec(
            num_scalar_prefetch=0,
            grid=grid,
            in_specs=[
                pl.BlockSpec((block_rows, hidden), lambda i: (i, 0)),
                pl.BlockSpec((1, hidden), lambda i: (0, 0)),
                pl.BlockSpec((1, hidden), lambda i: (0, 0)),
            ],
            out_specs=pl.BlockSpec((block_rows, hidden), lambda i: (i, 0)),
        ),
        compiler_params=pltpu.CompilerParams(
            dimension_semantics=("parallel",),
            vmem_limit_bytes=int(vmem_limit),
        ),
        cost_estimate=cost,
    )(x2, w2, b2)

    return out.reshape(orig_shape)


def layer_norm_reference(x, weight, bias, eps=1e-12):
    u = jnp.mean(x, axis=-1, keepdims=True)
    s = jnp.mean((x - u) ** 2, axis=-1, keepdims=True)
    xn = (x - u) / jnp.sqrt(s + eps)
    return weight * xn + bias


if __name__ == "__main__":
    key = jax.random.PRNGKey(0)

    # Deterministic parameter init matching the PyTorch module's __init__:
    # weight = ones(hidden), bias = zeros(hidden).
    batch, seq, hidden = 2, 8, 32
    weight = jnp.ones((hidden,), dtype=jnp.float32)
    bias = jnp.zeros((hidden,), dtype=jnp.float32)

    # Main check: auto-sized block_rows.
    x = jax.random.normal(key, (batch, seq, hidden), dtype=jnp.float32)
    out = layer_norm_pallas(x, weight, bias, eps=1e-12)
    out = jax.block_until_ready(out)
    ref = layer_norm_reference(x, weight, bias, eps=1e-12)
    assert out.shape == x.shape
    assert jnp.allclose(out, ref, atol=1e-4, rtol=1e-4), "mismatch vs reference"

    # Ragged-grid check (rows % block_rows != 0): locks in that the masked
    # last block never contaminates valid rows.
    x_rag = jax.random.normal(jax.random.PRNGKey(1), (5, 4, hidden), dtype=jnp.float32)
    out_rag = layer_norm_pallas(x_rag, weight, bias, eps=1e-12, block_rows=8)
    out_rag = jax.block_until_ready(out_rag)
    ref_rag = layer_norm_reference(x_rag, weight, bias, eps=1e-12)
    assert out_rag.shape == x_rag.shape
    assert jnp.allclose(out_rag, ref_rag, atol=1e-4, rtol=1e-4), "ragged mismatch"

    print("KERNEL_OK")
</pallas_src>

<mosaic_0001>
module attributes {stable_mosaic.version = 11 : i64} {
  func.func @_layernorm_kernel(%arg0: i32, %arg1: memref<16x32xf32, #tpu.memory_space<vmem>>, %arg2: memref<1x32xf32, #tpu.memory_space<vmem>>, %arg3: memref<1x32xf32, #tpu.memory_space<vmem>>, %arg4: memref<16x32xf32, #tpu.memory_space<vmem>>) attributes {dimension_semantics = [#tpu.dimension_semantics<parallel>], iteration_bounds = array<i64: 1>, scalar_prefetch = 0 : i64, scratch_operands = 0 : i64, tpu.core_type = #tpu.core_type<tc>, window_params = [{transform_indices = @transform_0, window_bounds = array<i64: 16, 32>}, {pipeline_mode = #tpu.pipeline_mode<synchronous>, transform_indices = @transform_1, window_bounds = array<i64: 1, 32>}, {pipeline_mode = #tpu.pipeline_mode<synchronous>, transform_indices = @transform_2, window_bounds = array<i64: 1, 32>}, {transform_indices = @transform_3, window_bounds = array<i64: 16, 32>}]} {
    %c0 = arith.constant 0 : index
    %c0_0 = arith.constant 0 : index
    %0 = vector.load %arg1[%c0, %c0_0] : memref<16x32xf32, #tpu.memory_space<vmem>>, vector<16x32xf32>
    %cst = arith.constant dense<0.000000e+00> : vector<16xf32>
    %1 = vector.multi_reduction <add>, %0, %cst [1] : vector<16x32xf32> to vector<16xf32>
    %2 = vector.shape_cast %1 : vector<16xf32> to vector<16x1xf32>
    %3 = arith.mulf %0, %0 : vector<16x32xf32>
    %cst_1 = arith.constant dense<0.000000e+00> : vector<16xf32>
    %4 = vector.multi_reduction <add>, %3, %cst_1 [1] : vector<16x32xf32> to vector<16xf32>
    %5 = vector.shape_cast %4 : vector<16xf32> to vector<16x1xf32>
    %cst_2 = arith.constant 3.125000e-02 : f32
    %6 = vector.broadcast %cst_2 : f32 to vector<16x1xf32>
    %7 = arith.mulf %2, %6 : vector<16x1xf32>
    %cst_3 = arith.constant 3.125000e-02 : f32
    %8 = vector.broadcast %cst_3 : f32 to vector<16x1xf32>
    %9 = arith.mulf %5, %8 : vector<16x1xf32>
    %10 = arith.mulf %7, %7 : vector<16x1xf32>
    %11 = arith.subf %9, %10 : vector<16x1xf32>
    %cst_4 = arith.constant 0.000000e+00 : f32
    %12 = vector.broadcast %cst_4 : f32 to vector<16x1xf32>
    %13 = arith.maximumf %11, %12 : vector<16x1xf32>
    %cst_5 = arith.constant 9.99999996E-13 : f32
    %14 = vector.broadcast %cst_5 : f32 to vector<16x1xf32>
    %15 = arith.addf %13, %14 : vector<16x1xf32>
    %16 = math.rsqrt %15 : vector<16x1xf32>
    %17 = vector.broadcast %7 : vector<16x1xf32> to vector<16x32xf32>
    %18 = arith.subf %0, %17 : vector<16x32xf32>
    %19 = vector.broadcast %16 : vector<16x1xf32> to vector<16x32xf32>
    %20 = arith.mulf %18, %19 : vector<16x32xf32>
    %c0_6 = arith.constant 0 : index
    %c0_7 = arith.constant 0 : index
    %21 = vector.load %arg2[%c0_6, %c0_7] : memref<1x32xf32, #tpu.memory_space<vmem>>, vector<1x32xf32>
    %22 = vector.broadcast %21 : vector<1x32xf32> to vector<16x32xf32>
    %23 = arith.mulf %20, %22 : vector<16x32xf32>
    %c0_8 = arith.constant 0 : index
    %c0_9 = arith.constant 0 : index
    %24 = vector.load %arg3[%c0_8, %c0_9] : memref<1x32xf32, #tpu.memory_space<vmem>>, vector<1x32xf32>
    %25 = vector.broadcast %24 : vector<1x32xf32> to vector<16x32xf32>
    %26 = arith.addf %23, %25 : vector<16x32xf32>
    %c0_10 = arith.constant 0 : index
    %c0_11 = arith.constant 0 : index
    %27 = vector.load %arg4[%c0_10, %c0_11] : memref<16x32xf32, #tpu.memory_space<vmem>>, vector<16x32xf32>
    tpu.vector_store %arg4[%c0_10, %c0_11], %26 {strides = array<i32>} : memref<16x32xf32, #tpu.memory_space<vmem>>, vector<16x32xf32>,
    return
  }
  func.func @transform_0(%arg0: i32) -> (i32, i32) {
    %c0_i32 = arith.constant 0 : i32
    %c0_i32_0 = arith.constant 0 : i32
    return %arg0, %c0_i32 : i32, i32
  }
  func.func @transform_1(%arg0: i32) -> (i32, i32) {
    %c0_i32 = arith.constant 0 : i32
    %c0_i32_0 = arith.constant 0 : i32
    %c0_i32_1 = arith.constant 0 : i32
    return %c0_i32, %c0_i32_0 : i32, i32
  }
  func.func @transform_2(%arg0: i32) -> (i32, i32) {
    %c0_i32 = arith.constant 0 : i32
    %c0_i32_0 = arith.constant 0 : i32
    %c0_i32_1 = arith.constant 0 : i32
    return %c0_i32, %c0_i32_0 : i32, i32
  }
  func.func @transform_3(%arg0: i32) -> (i32, i32) {
    %c0_i32 = arith.constant 0 : i32
    %c0_i32_0 = arith.constant 0 : i32
    return %arg0, %c0_i32 : i32, i32
  }
}

</mosaic_0001>

<bundles_post_ra>
// kernel: tpu_custom_call.1
= control target key start
LH: loop header
LB: loop body
LE: loop exit
PB: predicated region body
PF: predicated region fallthrough
CT: control target
= control target key end

     0   :  { %8 = vsyncpa [#allocation3], 0  ;;  %s225_s0 = inlined_call_operand.hbm [shape: f32[16,32], index: 0, kind: input, shape index: {}]   ;;  %s226_s1 = inlined_call_operand.vmem [shape: f32[1,32], index: 1, kind: input, shape index: {}]   ;;  %s227_s2 = inlined_call_operand.vmem [shape: f32[1,32], index: 2, kind: input, shape index: {}]   ;;  %s228_s3 = inlined_call_operand.hbm [shape: f32[16,32], index: 3, kind: output, shape index: {}]  }
   0x1   :  { %9 = vsyncpa [#allocation4], 0  ;;  %s159_s12 = smov [#allocation2]   ;;  %s111_s16 = scalar_lea.hbm %s225_s0, 256 }
   0x2   :  { %s15_s13 = sshll.u32 %s159_s12, 4  ;;  %p112_p0 = scmp.ne.s32.totalorder %s225_s0, %s111_s16  ;;  %s16_s13 = int_to_ptr.vmem [resolvable:$true] %s15_s13 }
   0x3   :  { %p115_p1 = scmp.lt.u32.totalorder %s111_s16, %s225_s0 }
   0x5   :  { %p117_p2 = pnand %p115_p1, %p112_p0 }
   0x7   :  { %120 = shalt.err (!%p117_p2)
}
   0x8   :  { %s121_s21 = scalar_lea.vmem %s16_s13, 256  ;;  %p126_p4 = scmp.lt.s32.totalorder %s16_s13, %s16_s13 }
   0x9   :  { %p122_p3 = scmp.ne.s32.totalorder %s16_s13, %s121_s21  ;;  %p127_p5 = scmp.lt.s32.totalorder %s121_s21, %s121_s21 }
   0xb   :  { %p128_p6 = por %p127_p5, %p126_p4 }
   0xd   :  { %p129_p7 = pnand %p128_p6, %p122_p3 }
   0xf   :  { %132 = shalt.err (!%p129_p7)
}
  0x10   :  { %s160_s22 = smov 128   ;;  %s161_s23 = smov 8  }
  0x11   :  { %21 = dma.hbm_to_vmem [thread:$0]  %s225_s0, 256, %s16_s13, [#allocation3], %s160_s22, %s160_s22, %s161_s23  }
  0x12   :  { %155 = dma.done.wait [#allocation3], 256  }
  0x13   :  { %156 = vsyncadd [#allocation3], 4294967040  ;;  %vm31_vm0 = vcmask 261120   ;;  %v29_v0 = vld [vmem:[#allocation2] sm:$0xff]  ;;  %v30_v1 = vld [vmem:[#allocation2 + $0x8] sm:$0xff]  ;;  %s162_s29 = smov [#allocation5]  }
  0x14   :  { %v32_v2 = vsel %vm31_vm0, %v29_v0, 0.0  ;;  %v38_v3 = vmul.f32 %v29_v0, %v29_v0  ;;  %v39_v4 = vmul.f32 %v30_v1, %v30_v1  ;;  %v35_v6 = vsel %vm31_vm0, %v30_v1, 0.0  ;;  %v101_v26 = vld [vmem:[%s226_s1] ss:$0 sm:$0xff]  ;;  %s89_s30 = sshll.u32 %s162_s29, 4  ;;  %s90_s30 = int_to_ptr.vmem [resolvable:$true] %s89_s30 }
  0x15   :  { %33 = vadd.xlane.f32.xlu0 %v32_v2  ;;  %v102_v28 = vld [vmem:[%s227_s2] ss:$0 sm:$0xff]  ;;  %s133_s1 = scalar_lea.vmem %s90_s30, 256  ;;  %p138_p9 = scmp.lt.s32.totalorder %s90_s30, %s90_s30 }
  0x16   :  { %v40_v5 = vsel %vm31_vm0, %v38_v3, 0.0  ;;  %v43_v7 = vsel %vm31_vm0, %v39_v4, 0.0  ;;  %p134_p8 = scmp.ne.s32.totalorder %s90_s30, %s133_s1  ;;  %p139_p10 = scmp.lt.s32.totalorder %s133_s1, %s133_s1 }
  0x17   :  { %41 = vadd.xlane.f32.xlu1 %v40_v5 }
  0x18   :  { %p140_p11 = por %p139_p10, %p138_p9 }
  0x19   :  { %36 = vadd.xlane.f32.xlu0 %v35_v6 }
  0x1a   :  { %p141_p12 = pnand %p140_p11, %p134_p8 }
  0x1b   :  { %44 = vadd.xlane.f32.xlu1 %v43_v7 }
  0xa2   :  { %v34_v8 = vpop.xlane.xlu0 %33 }
  0xa3   :  { %v46_v9 = vmul.f32 0.03125, %v34_v8 }
  0xa4   :  { %v42_v10 = vpop.xlane.xlu1 %41 }
  0xa5   :  { %v50_v11 = vmul.f32 %v46_v9, %v46_v9  ;;  %v48_v12 = vmul.f32 0.03125, %v42_v10  ;;  %v60_v24 = vsub.f32 %v29_v0, %v46_v9 }
  0xa6   :  { %v37_v13 = vpop.xlane.xlu0 %36 }
  0xa7   :  { %v52_v14 = vsub.f32 %v48_v12, %v50_v11  ;;  %v47_v15 = vmul.f32 0.03125, %v37_v13 }
  0xa8   :  { %v45_v16 = vpop.xlane.xlu1 %44 }
  0xa9   :  { %v54_v17 = vmax.f32 %v52_v14, 0.0  ;;  %v51_v18 = vmul.f32 %v47_v15, %v47_v15  ;;  %v49_v19 = vmul.f32 0.03125, %v45_v16  ;;  %v61_v29 = vsub.f32 %v30_v1, %v47_v15 }
  0xab   :  { %v56_v20 = vadd.f32 1e-12, %v54_v17  ;;  %v53_v21 = vsub.f32 %v49_v19, %v51_v18 }
  0xad   :  { %107 = vrsqrt.f32 %v56_v20  ;;  %v55_v22 = vmax.f32 %v53_v21, 0.0 }
  0xaf   :  { %v57_v23 = vadd.f32 1e-12, %v55_v22 }
  0xb1   :  { %109 = vrsqrt.f32 %v57_v23 }
  0xb7   :  { %v108_v25 = vpop.eup %107 }
  0xb8   :  { %v62_v27 = vmul.f32 %v108_v25, %v60_v24 }
  0xba   :  { %v71_v30 = vmul.f32 %v101_v26, %v62_v27 }
  0xbb   :  { %v110_v31 = vpop.eup %109 }
  0xbc   :  { %v63_v32 = vmul.f32 %v110_v31, %v61_v29  ;;  %v80_v33 = vadd.f32 %v102_v28, %v71_v30 }
  0xbe   :  { %v72_v34 = vmul.f32 %v101_v26, %v63_v32  ;;  %82 = vst.msk [vmem:[#allocation5] sm:$0xff] %vm31_vm0, %v80_v33 }
  0xc0   :  { %v81_v35 = vadd.f32 %v102_v28, %v72_v34 }
  0xc2   :  { %83 = vst.msk [vmem:[#allocation5 + $0x8] sm:$0xff] %vm31_vm0, %v81_v35 }
  0xc3   :  { %144 = shalt.err (!%p141_p12)
}
  0xc4   :  { %s145_s5 = scalar_lea.hbm %s228_s3, 256 }
  0xc5   :  { %p146_p13 = scmp.ne.s32.totalorder %s228_s3, %s145_s5  ;;  %p149_p0 = scmp.lt.u32.totalorder %s145_s5, %s228_s3 }
  0xc7   :  { %p151_p1 = pnand %p149_p0, %p146_p13 }
  0xc9   :  { %154 = shalt.err (!%p151_p1)
}
  0xca   :  { %95 = dma.vmem_to_hbm [thread:$0]  %s90_s30, 256, %s228_s3, [#allocation4], %s160_s22, %s160_s22, %s161_s23  }
  0xcb   :  { %157 = dma.done.wait [#allocation4], 256  }
  0xcc   :  { %158 = vsyncadd [#allocation4], 4294967040 }
  0xcd   :  { %99 = vsyncpa [#allocation3], 1 }
  0xce   :  { %100 = vsyncpa [#allocation4], 1 }

</bundles_post_ra>
